<compile_context>
chip_gen: v7x
topology: tpu7x:2x2x1
jax: 0.10.0
libtpu: 0.0.40
codegen_flags: <defaults>
</compile_context>

<pallas_src>
import jax
import jax.numpy as jnp
from jax.experimental import pallas as pl
from jax.experimental.pallas import tpu as pltpu


def _pos_embed_kernel(pe_ref, x_ref, o_ref):
    # pe_ref: (T, S*D)   positional rows, pre-tiled across the stock axis S
    # x_ref : (Bb, T, S*D) slab of the (reshaped) input
    # o_ref : (Bb, T, S*D) matching output slab
    o_ref[...] = x_ref[...] + pe_ref[...][None, :, :]


def positional_embedding(x, pos_weight):
    """x: [B, T, S, D], pos_weight: [max_len, D]. Returns x + pos_embed(arange(T))."""
    B, T, S, D = x.shape
    max_len, Dw = pos_weight.shape
    if Dw != D:
        raise ValueError(f"d_model mismatch: x has {D}, embedding has {Dw}")
    if T > max_len:
        # nn.Embedding would raise on out-of-range indices; don't silently clamp.
        raise ValueError(f"sequence length T={T} exceeds max_len={max_len}")

    SD = S * D
    itemsize = jnp.dtype(x.dtype).itemsize

    # --- glue (plain JAX, cheap): lane-dense layout --------------------------
    # x : [B, T, S, D] -> [B, T, S*D]  (contiguous reshape, free)
    # pe: W[:T]        -> [T, S*D]     (each row repeated S times along lanes)
    x_r = x.reshape(B, T, SD)
    pe = jnp.tile(pos_weight[:T].astype(x.dtype), (1, S))  # (T, S*D)

    # --- tiling: grid over batch blocks only ----------------------------------
    per_b_bytes = T * SD * itemsize
    target_tile_bytes = 4 << 20  # ~4 MiB x tiles: amortizes per-step overhead
    Bb = max(1, min(B, target_tile_bytes // max(per_b_bytes, 1)))
    if B >= 2:
        Bb = min(Bb, -(-B // 2))  # keep >= 2 grid steps for v7x megacore split
    nb = pl.cdiv(B, Bb)

    tile_bytes = Bb * T * SD * itemsize
    pe_bytes = T * SD * itemsize
    # 2x double-buffered in + 2x out tiles + (possibly double-buffered) pe + slack
    vmem_limit = int(min(48 << 20,
                         max(16 << 20, 4 * tile_bytes + 2 * pe_bytes + (2 << 20))))

    out = pl.pallas_call(
        _pos_embed_kernel,
        out_shape=jax.ShapeDtypeStruct((B, T, SD), x.dtype),
        grid_spec=pltpu.PrefetchScalarGridSpec(
            num_scalar_prefetch=0,
            grid=(nb,),
            in_specs=[
                # same pe block for every step -> DMA'd once, stays VMEM-resident
                pl.BlockSpec((T, SD), lambda i: (0, 0)),
                pl.BlockSpec((Bb, T, SD), lambda i: (i, 0, 0)),
            ],
            out_specs=pl.BlockSpec((Bb, T, SD), lambda i: (i, 0, 0)),
        ),
        compiler_params=pltpu.CompilerParams(
            dimension_semantics=("parallel",),
            vmem_limit_bytes=vmem_limit,
        ),
        # NOTE: if the caller never reuses x, input_output_aliases={1: 0} would
        # drop the extra HBM allocation; left off to keep x untouched.
    )(pe, x_r)

    return out.reshape(B, T, S, D)


if __name__ == "__main__":
    B, T, S, D = 2, 8, 16, 32
    max_len = 16

    key = jax.random.PRNGKey(0)
    kx, kw = jax.random.split(key)
    x = jax.random.normal(kx, (B, T, S, D), dtype=jnp.float32)
    # Deterministic stand-in for nn.Embedding(max_len, d_model).weight (~N(0, 1))
    pos_weight = jax.random.normal(kw, (max_len, D), dtype=jnp.float32)

    out = jax.block_until_ready(positional_embedding(x, pos_weight))

    # Reference check (pure JAX)
    ref = x + pos_weight[:T][None, :, None, :]
    assert out.shape == (B, T, S, D)
    assert jnp.allclose(out, ref, atol=1e-6), "mismatch vs reference"

    print("KERNEL_OK")
</pallas_src>

<mosaic_0001>
module attributes {stable_mosaic.version = 11 : i64} {
  func.func @_pos_embed_kernel(%arg0: i32, %arg1: memref<8x512xf32, #tpu.memory_space<vmem>>, %arg2: memref<1x8x512xf32, #tpu.memory_space<vmem>>, %arg3: memref<1x8x512xf32, #tpu.memory_space<vmem>>) attributes {dimension_semantics = [#tpu.dimension_semantics<parallel>], iteration_bounds = array<i64: 2>, scalar_prefetch = 0 : i64, scratch_operands = 0 : i64, tpu.core_type = #tpu.core_type<tc>, window_params = [{pipeline_mode = #tpu.pipeline_mode<synchronous>, transform_indices = @transform_0, window_bounds = array<i64: 8, 512>}, {transform_indices = @transform_1, window_bounds = array<i64: 1, 8, 512>}, {transform_indices = @transform_2, window_bounds = array<i64: 1, 8, 512>}]} {
    %c0 = arith.constant 0 : index
    %c0_0 = arith.constant 0 : index
    %c0_1 = arith.constant 0 : index
    %0 = vector.load %arg2[%c0, %c0_0, %c0_1] : memref<1x8x512xf32, #tpu.memory_space<vmem>>, vector<1x8x512xf32>
    %c0_2 = arith.constant 0 : index
    %c0_3 = arith.constant 0 : index
    %1 = vector.load %arg1[%c0_2, %c0_3] : memref<8x512xf32, #tpu.memory_space<vmem>>, vector<8x512xf32>
    %2 = vector.shape_cast %1 : vector<8x512xf32> to vector<1x8x512xf32>
    %3 = arith.addf %0, %2 : vector<1x8x512xf32>
    %c0_4 = arith.constant 0 : index
    %c0_5 = arith.constant 0 : index
    %c0_6 = arith.constant 0 : index
    %4 = vector.load %arg3[%c0_4, %c0_5, %c0_6] : memref<1x8x512xf32, #tpu.memory_space<vmem>>, vector<1x8x512xf32>
    tpu.vector_store %arg3[%c0_4, %c0_5, %c0_6], %3 {strides = array<i32>} : memref<1x8x512xf32, #tpu.memory_space<vmem>>, vector<1x8x512xf32>,
    return
  }
  func.func @transform_0(%arg0: i32) -> (i32, i32) {
    %c0_i32 = arith.constant 0 : i32
    %c0_i32_0 = arith.constant 0 : i32
    %c0_i32_1 = arith.constant 0 : i32
    return %c0_i32, %c0_i32_0 : i32, i32
  }
  func.func @transform_1(%arg0: i32) -> (i32, i32, i32) {
    %c0_i32 = arith.constant 0 : i32
    %c0_i32_0 = arith.constant 0 : i32
    %c0_i32_1 = arith.constant 0 : i32
    return %arg0, %c0_i32, %c0_i32_0 : i32, i32, i32
  }
  func.func @transform_2(%arg0: i32) -> (i32, i32, i32) {
    %c0_i32 = arith.constant 0 : i32
    %c0_i32_0 = arith.constant 0 : i32
    %c0_i32_1 = arith.constant 0 : i32
    return %arg0, %c0_i32, %c0_i32_0 : i32, i32, i32
  }
}

</mosaic_0001>

<bundles_post_ra>
// kernel: tpu_custom_call.1
= control target key start
LH: loop header
LB: loop body
LE: loop exit
PB: predicated region body
PF: predicated region fallthrough
CT: control target
= control target key end

     0   :  { %7 = vsyncpa [#allocation3], 0  ;;  %s710_s0 = inlined_call_operand.hbm [shape: f32[8,512], index: 0, kind: input, shape index: {}]   ;;  %s711_s1 = inlined_call_operand.hbm [shape: f32[2,8,512], index: 1, kind: input, shape index: {}]   ;;  %s712_s2 = inlined_call_operand.hbm [shape: f32[2,8,512], index: 2, kind: output, shape index: {}]  }
   0x1   :  { %8 = vsyncpa [#allocation6], 0 }
   0x2   :  { %10 = vsyncpa [#allocation6 + $0x1], 0 }
   0x3   :  { %11 = vsyncpa [#allocation4], 0 }
   0x4   :  { %13 = vsyncpa [#allocation4 + $0x1], 0  ;;  %s509_s9 = smov 0   ;;  %s511_s10 = smov 0  }
   0x5   :  { %s513_s11 = smov 0   ;;  %s515_s12 = smov 0  }
   0x6 LB: > { %s530_s13 = sadd.s32 4294967295, %s489_s12   ;;  %s286_s14 = sadd.s32 4294967294, %s489_s12   ;;  %s489_s12 = sphi %s515_s12, %s736_s12   ;;  %s485_s11 = sphi %s513_s11, %s735_s11   ;;  %s481_s10 = sphi %s511_s10, %s734_s10   ;;  %s477_s9 = sphi %s509_s9, %s733_s9  }
   0x7   : > { %p60_p0 = scmp.ne.s32.totalorder %s481_s10, %s477_s9  ;;  %p713_p1 = scmp.eq.s32.totalorder %s530_s13, 0 }
   0x8   : > { %p90_p3 = scmp.eq.s32.totalorder %s286_s14, 1  ;;  %p287_p5 = scmp.ge.s32.totalorder %s489_s12, 1 }
   0x9   : > { %p539_p4 = por %p713_p1, %p60_p0  ;;  %p97_p7 = scmp.lt.s32.totalorder %s489_s12, 3 }
   0xa   : > { %p544_p6 = por %p90_p3, %p60_p0  ;;  %s491_s18 = smov [#allocation2]  }
   0xb   : > { %s716_s15 = scalar_select %p539_p4, 1, 0 }
   0xc   : > { %s717_s16 = scalar_select %p544_p6, 1, 0 }
   0xd   : > { %p549_p8 = pnand %p287_p5, %p97_p7  ;;  %s110_s19 = sshll.u32 %s491_s18, 4  ;;  %s111_s19 = int_to_ptr.vmem [resolvable:$true] %s110_s19 }
   0xe   : > { %s557_s20 = sadd.s32 1, %s489_s12   ;;  %s47_s24 = sadd.s32 1, %s485_s11 }
   0xf   : > { %s718_s17 = scalar_select %p549_p8, 1, 0 }
  0x10   : > { %p312_p10 = pneg %p549_p8  ;;  %s44_s22 = ssub.s32 %s489_s12, %s557_s20 }
  0x11   : > { %p567_p12 = scmp.eq.s32.totalorder %s44_s22, 0  ;;  %s361_s27 = scalar_lea.hbm %s710_s0, 512 }
  0x12   : > { %p561_p11 = pnand %p312_p10, %p713_p1  ;;  %p362_p0 = scmp.ne.s32.totalorder %s710_s0, %s361_s27 }
  0x13   : > { %s720_s23 = scalar_select %p567_p12, 1, 0 }
  0x14   : > { %p363_p3 = pneg %p561_p11  ;;  %p368_p10 = scmp.lt.u32.totalorder %s361_s27, %s710_s0 }
  0x16   : > { %p364_p5 = pnand %p363_p3, %p362_p0 }
  0x18   : > { %p365_p7 = pneg %p364_p5 }
  0x1a   : > { %p370_p9 = pnand %p368_p10, %p365_p7 }
  0x1c   : > { %373 = shalt.err (!%p370_p9)
}
  0x1d   : > { %s374_s4 = scalar_lea.vmem %s111_s19, 512  ;;  %p382_p6 = scmp.lt.s32.totalorder %s111_s19, %s111_s19 }
  0x1e   : > { %p375_p1 = scmp.ne.s32.totalorder %s111_s19, %s374_s4  ;;  %p383_p4 = scmp.lt.s32.totalorder %s374_s4, %s374_s4 }
  0x20   : > { %p377_p2 = pnand %p375_p1, %p363_p3  ;;  %p384_p8 = por %p383_p4, %p382_p6 }
  0x22   : > { %p378_p13 = pneg %p377_p2 }
  0x24   : > { %p385_p12 = pnand %p384_p8, %p378_p13 }
  0x26   : > { %388 = shalt.err (!%p385_p12)
}
  0x27   : > { %315 = dma.hbm_to_vmem [thread:$0]  (!%p561_p11), %s710_s0, 512, %s111_s19, [#allocation3]  }
  0x28   : > { %p721_p1 = scmp.ne.s32.totalorder %s720_s23, 0  ;;  %p55_p2 = scmp.eq.s32.totalorder %s489_s12, 0 }
  0x29   : > { %p722_p4 = scmp.ne.s32.totalorder %s485_s11, %s481_s10  ;;  %p723_p6 = scmp.eq.s32.totalorder %s530_s13, 1 }
  0x2a   : > { %s593_s7 = scalar_select %p721_p1, %s485_s11, %s47_s24  }
  0x2b   : > { %p601_p8 = por %p723_p6, %p722_p4  ;;  %p325_p9 = scmp.lt.s32.totalorder %s489_s12, 2 }
  0x2c   : > { %s121_s14 = sand.u32 1, %s485_s11   ;;  %p725_p12 = pmov %p722_p4 }
  0x2d   : > { %s290_s18 = sshll.u32 %s121_s14, 5  ;;  %s302_s21 = sshll.u32 %s489_s12, 9 }
  0x2e   : > { %p56_p13 = por %p55_p2, %p725_p12  ;;  %s614_s19 = scalar_lea.hbm %s711_s1, %s302_s21 }
  0x2f   : > { %s125_s23 = scalar_lea.vmem [#allocation5], %s290_s18  ;;  %s122_s27 = scalar_lea.sflag [#allocation6], %s121_s14 }
  0x30   : > { %s133_s24 = sshll.u32 %s125_s23, 4  ;;  %p616_p11 = pnand %p325_p9, %p56_p13  ;;  %s620_s24 = int_to_ptr.vmem [resolvable:$true] %s133_s24 }
  0x31   : > { %s389_s28 = scalar_lea.hbm %s614_s19, 512  ;;  %s394_s3 = scalar_lea.hbm %s711_s1, 1024 }
  0x32   : > { %p390_p0 = scmp.ne.s32.totalorder %s614_s19, %s389_s28  ;;  %p391_p3 = pneg %p616_p11 }
  0x33   : > { %p395_p10 = scmp.lt.u32.totalorder %s614_s19, %s711_s1  ;;  %p396_p1 = scmp.lt.u32.totalorder %s394_s3, %s389_s28 }
  0x34   : > { %p392_p5 = pnand %p391_p3, %p390_p0  ;;  %p398_p4 = scmp.lt.u32.totalorder %s389_s28, %s614_s19 }
  0x35   : > { %p397_p2 = por %p396_p1, %p395_p10 }
  0x36   : > { %p393_p7 = pneg %p392_p5 }
  0x37   : > { %p399_p6 = por %p398_p4, %p397_p2 }
  0x39   : > { %p400_p9 = pnand %p399_p6, %p393_p7 }
  0x3b   : > { %403 = shalt.err (!%p400_p9)
}
  0x3c   : > { %s404_s6 = scalar_lea.vmem %s620_s24, 512  ;;  %s492_s14 = smov [#allocation5]  }
  0x3d   : > { %p405_p12 = scmp.ne.s32.totalorder %s620_s24, %s404_s6  ;;  %s409_s18 = sshll.u32 %s492_s14, 4  ;;  %s410_s18 = int_to_ptr.vmem [resolvable:$false] %s409_s18 }
  0x3e   : > { %s411_s21 = scalar_lea.vmem %s410_s18, 1024  ;;  %p412_p5 = scmp.lt.s32.totalorder %s620_s24, %s410_s18 }
  0x3f   : > { %p407_p13 = pnand %p405_p12, %p391_p3  ;;  %p413_p10 = scmp.lt.s32.totalorder %s411_s21, %s404_s6 }
  0x41   : > { %p408_p0 = pneg %p407_p13  ;;  %p414_p1 = por %p413_p10, %p412_p5 }
  0x43   : > { %p415_p2 = pnand %p414_p1, %p408_p0 }
  0x45   : > { %418 = shalt.err (!%p415_p2)
}
  0x46   : > { %319 = dma.hbm_to_vmem [thread:$0]  (!%p616_p11), %s614_s19, 512, %s620_s24, %s122_s27  }
  0x47   : > { %p727_p7 = scmp.ne.s32.totalorder %s718_s17, 0 }
  0x48   : > { %p728_p3 = scmp.eq.s32.totalorder (!%p727_p7), %s530_s13, 0 }
  0x49   : > { %142 = sbr.rel (%p727_p7) target bundleno = 110 (0x6e), region = 28 }
  0x50   : > { %464 = dma.done.wait (%p728_p3), [#allocation3], 512   ;;  %p729_p4 = pmov %p728_p3 }
  0x51   : > { %s654_s22 = sand.u32 1, %s481_s10   ;;  %p730_p6 = scmp.ne.s32.totalorder %s716_s15, 0 }
  0x52   : > { %466 = vsyncadd (%p729_p4), [#allocation3], 4294966784  ;;  %s295_s25 = sshll.u32 %s654_s22, 5  ;;  %s149_s23 = scalar_lea.sflag [#allocation6], %s654_s22 }
  0x53   : > { %s152_s26 = scalar_lea.vmem [#allocation5], %s295_s25 }
  0x54   : > { %468 = dma.done.wait (%p730_p6), %s149_s23, 512  }
  0x55   : > { %470 = vsyncadd (%p730_p6), %s149_s23, 4294966784  ;;  %v173_v0 = vld [vmem:[%s152_s26] sm:$0xff]  ;;  %s172_s17 = scalar_lea.vmem [#allocation7], %s295_s25  ;;  %v174_v2 = vld [vmem:[%s152_s26 + $0x8] sm:$0xff]  ;;  %s303_s24 = sshll.u32 %s530_s13, 9 }
  0x56   : > { %v177_v1 = vld [vmem:[#allocation2] sm:$0xff]  ;;  %s204_s19 = sshll.u32 %s172_s17, 4  ;;  %v178_v4 = vld [vmem:[#allocation2 + $0x8] sm:$0xff]  ;;  %v175_v5 = vld [vmem:[%s152_s26 + $0x10] sm:$0xff]  ;;  %s668_s13 = scalar_lea.hbm %s712_s2, %s303_s24  ;;  %s663_s19 = int_to_ptr.vmem [resolvable:$true] %s204_s19 }
  0x57   : > { %v181_v3 = vadd.f32 %v177_v1, %v173_v0  ;;  %v179_v6 = vld [vmem:[#allocation2 + $0x10] sm:$0xff]  ;;  %v182_v7 = vadd.f32 %v178_v4, %v174_v2  ;;  %v176_v9 = vld [vmem:[%s152_s26 + $0x18] sm:$0xff]  ;;  %s190_s28 = scalar_lea.sflag [#allocation4], %s654_s22  ;;  %s419_s29 = scalar_lea.vmem %s663_s19, 512 }
  0x58   : > { %v183_v8 = vadd.f32 %v179_v6, %v175_v5  ;;  %v180_v10 = vld [vmem:[#allocation2 + $0x18] sm:$0xff]  ;;  %p420_p11 = scmp.ne.s32.totalorder %s663_s19, %s419_s29  ;;  %s493_s30 = smov [#allocation7]  }
  0x59   : > { %185 = vst [vmem:[%s172_s17] sm:$0xff] %v181_v3  ;;  %v184_v11 = vadd.f32 %v180_v10, %v176_v9  ;;  %186 = vst [vmem:[%s172_s17 + $0x8] sm:$0xff] %v182_v7  ;;  %s423_s3 = sshll.u32 %s493_s30, 4  ;;  %s424_s3 = int_to_ptr.vmem [resolvable:$false] %s423_s3 }
  0x5a   : > { %187 = vst [vmem:[%s172_s17 + $0x10] sm:$0xff] %v183_v8  ;;  %p421_p9 = pnand %p420_p11, %p601_p8  ;;  %s425_s4 = scalar_lea.vmem %s424_s3, 1024 }
  0x5b   : > { %188 = vst [vmem:[%s172_s17 + $0x18] sm:$0xff] %v184_v11  ;;  %p426_p13 = scmp.lt.s32.totalorder %s663_s19, %s424_s3  ;;  %p427_p0 = scmp.lt.s32.totalorder %s425_s4, %s419_s29 }
  0x5c   : > { %p422_p12 = pneg %p421_p9 }
  0x5d   : > { %p428_p5 = por %p427_p0, %p426_p13 }
  0x5f   : > { %p429_p10 = pnand %p428_p5, %p422_p12 }
  0x61   : > { %432 = shalt.err (!%p429_p10)
}
  0x62   : > { %s433_s5 = scalar_lea.hbm %s668_s13, 512  ;;  %s437_s18 = scalar_lea.hbm %s712_s2, 1024 }
  0x63   : > { %p434_p1 = scmp.ne.s32.totalorder %s668_s13, %s433_s5  ;;  %p438_p3 = scmp.lt.u32.totalorder %s668_s13, %s712_s2 }
  0x64   : > { %p439_p4 = scmp.lt.u32.totalorder %s437_s18, %s433_s5  ;;  %p441_p11 = scmp.lt.u32.totalorder %s433_s5, %s668_s13 }
  0x65   : > { %p435_p2 = pnand %p434_p1, %p601_p8 }
  0x66   : > { %p440_p6 = por %p439_p4, %p438_p3 }
  0x67   : > { %p436_p7 = pneg %p435_p2 }
  0x68   : > { %p442_p9 = por %p441_p11, %p440_p6 }
  0x6a   : > { %p443_p12 = pnand %p442_p9, %p436_p7 }
  0x6c   : > { %446 = shalt.err (!%p443_p12)
}
  0x6d   : > { %310 = dma.vmem_to_hbm [thread:$0]  (%p601_p8), %s663_s19, 512, %s668_s13, %s190_s28  }
  0x6e PF: > { %s216_s25 = sand.u32 1, %s477_s9   ;;  %p731_p13 = scmp.ne.s32.totalorder %s717_s16, 0 }
  0x6f   : > { %p732_p0 = scmp.ge.s32.totalorder %s489_s12, 2  ;;  %s217_s23 = scalar_lea.sflag [#allocation4], %s216_s25 }
  0x71   : > { %p321_p5 = pnand %p732_p0, %p731_p13 }
  0x73   : > { %472 = dma.done.wait (!%p321_p5), %s217_s23, 512  }
  0x74   : > { %474 = vsyncadd (!%p321_p5), %s217_s23, 4294966784  ;;  %p16_p10 = scmp.ge.s32.totalorder %s557_s20, 4   ;;  %s733_s9 = smov %s481_s10 }
  0x75   : > { %s734_s10 = smov %s485_s11  ;;  %s735_s11 = smov %s593_s7 }
  0x76   : > { %s736_s12 = smov %s557_s20  ;;  %18 = sbr.rel (!%p16_p10) target bundleno = 6 (0x6), region = 78 }
  0x7d   :  { %222 = vsyncpa [#allocation3], 1 }
  0x7e   :  { %224 = vsyncpa [#allocation3 + $0x1], 1 }
  0x7f   :  { %225 = vsyncpa [#allocation6], 1 }
  0x80   :  { %227 = vsyncpa [#allocation6 + $0x1], 1 }
  0x81   :  { %228 = vsyncpa [#allocation4], 1 }
  0x82   :  { %230 = vsyncpa [#allocation4 + $0x1], 1 }

</bundles_post_ra>
